<compile_context>
chip_gen: v6e
topology: v6e:2x2x1
jax: 0.10.0
libtpu: 0.0.40
codegen_flags: <defaults>
</compile_context>

<pallas_src>
import functools

import jax
import jax.numpy as jnp
from jax.experimental import pallas as pl
from jax.experimental.pallas import tpu as pltpu


def _gather_kernel(tok_ref, table_hbm, out_ref, copy_sems, *, row_tile, vocab_size):
    """Gather `row_tile` embedding rows from the HBM table into the output tile.

    tok_ref   : (N_pad,) int32 in SMEM (scalar-prefetched token ids)
    table_hbm : (V, E) float32 ref left in HBM (memory_space=pl.ANY)
    out_ref   : (row_tile, E) float32 VMEM output tile
    copy_sems : DMA semaphore array of shape (row_tile,)
    """
    base = pl.program_id(0) * row_tile

    def row_copy(r):
        tok = tok_ref[base + r]
        # PyTorch nn.Embedding raises on out-of-range ids; clamp here so a bad
        # id cannot make the DMA engine read out of bounds.
        tok = jnp.clip(tok, 0, vocab_size - 1)
        return pltpu.make_async_copy(
            table_hbm.at[pl.ds(tok, 1), :],   # (1, E) row of the table in HBM
            out_ref.at[pl.ds(r, 1), :],       # (1, E) row of the output tile
            copy_sems.at[r],
        )

    # Issue every row gather for this tile, then wait on all of them.  The
    # gathers for tile i overlap with the pipeline's write-back of tile i-1.
    # row_tile is a small static int, so a Python loop (fully unrolled at
    # trace time) keeps all DMAs visible to the scheduler.
    copies = [row_copy(r) for r in range(row_tile)]
    for c in copies:
        c.start()
    for c in copies:
        c.wait()


def bert_embedder_forward(tokens, emb_table, *, row_tile=8):
    """tokens: (B, S) int32 ; emb_table: (V, E) float32 -> (B, S, E) float32.

    For production sizes (e.g. BERT-base: N=16K tokens, V=30522, E=768) use a
    larger row_tile (32-128) to amortize per-grid-step overhead and raise DMA
    concurrency; the table never has to fit in VMEM.
    """
    B, S = tokens.shape
    V, E = emb_table.shape
    N = B * S

    tok_flat = tokens.reshape(N).astype(jnp.int32)
    num_tiles = pl.cdiv(N, row_tile)
    n_pad = num_tiles * row_tile
    if n_pad != N:
        # Pad with token 0 (the padding row); padded rows are sliced off below.
        tok_flat = jnp.pad(tok_flat, (0, n_pad - N))

    kernel = functools.partial(_gather_kernel, row_tile=row_tile, vocab_size=V)
    itemsize = jnp.dtype(emb_table.dtype).itemsize

    out_flat = pl.pallas_call(
        kernel,
        out_shape=jax.ShapeDtypeStruct((n_pad, E), emb_table.dtype),
        grid_spec=pltpu.PrefetchScalarGridSpec(
            num_scalar_prefetch=1,                      # token ids -> SMEM
            grid=(num_tiles,),
            in_specs=[
                pl.BlockSpec(memory_space=pl.ANY),      # table stays in HBM
            ],
            out_specs=pl.BlockSpec((row_tile, E), lambda i, tok: (i, 0)),
            scratch_shapes=[pltpu.SemaphoreType.DMA((row_tile,))],
        ),
        compiler_params=pltpu.CompilerParams(
            dimension_semantics=("parallel",)),
        cost_estimate=pl.CostEstimate(
            flops=0,
            transcendentals=0,
            bytes_accessed=int(2 * n_pad * E * itemsize + 4 * n_pad)),
    )(tok_flat, emb_table)

    return out_flat[:N].reshape(B, S, E)


def init_embedding_table(key, vocab_size, emsize):
    # Deterministic synthetic init (stands in for the BERT-pretrained copy).
    w = jax.random.normal(key, (vocab_size, emsize), dtype=jnp.float32)
    # padding_idx=0 -> zero row 0, as nn.Embedding does at init.
    w = w.at[0].set(0.0)
    return w


if __name__ == "__main__":
    vocab_size = 512
    emsize = 128          # multiple of 128 -> lane-dense output tiles
    batch, seq = 2, 8

    key = jax.random.PRNGKey(0)
    k_w, k_tok = jax.random.split(key)

    emb_table = init_embedding_table(k_w, vocab_size, emsize)
    tokens = jax.random.randint(k_tok, (batch, seq), 0, vocab_size,
                                dtype=jnp.int32)

    out = bert_embedder_forward(tokens, emb_table, row_tile=8)
    out = jax.block_until_ready(out)

    # sanity check against plain-JAX gather (pure copy -> exact equality)
    ref = emb_table[tokens]
    assert out.shape == (batch, seq, emsize)
    assert jnp.array_equal(out, ref), "mismatch vs reference gather"

    print("KERNEL_OK")
</pallas_src>

<mosaic_0001>
module attributes {stable_mosaic.version = 11 : i64} {
  func.func @_gather_kernel(%arg0: i32, %arg1: memref<16xi32, #tpu.memory_space<smem>>, %arg2: memref<512x128xf32, #tpu.memory_space<any>>, %arg3: memref<8x128xf32, #tpu.memory_space<vmem>>, %arg4: memref<8x!tpu.dma_semaphore, #tpu.memory_space<semaphore_mem>>) attributes {dimension_semantics = [#tpu.dimension_semantics<parallel>], iteration_bounds = array<i64: 2>, scalar_prefetch = 1 : i64, scratch_operands = 1 : i64, tpu.core_type = #tpu.core_type<tc>, window_params = [{}, {transform_indices = @transform_1, window_bounds = array<i64: 8, 128>}]} {
    %c8_i32 = arith.constant 8 : i32
    %0 = arith.muli %arg0, %c8_i32 : i32
    %c0_i32 = arith.constant 0 : i32
    %1 = arith.addi %0, %c0_i32 : i32
    %2 = arith.index_cast %1 : i32 to index
    %3 = memref.load %arg1[%2] : memref<16xi32, #tpu.memory_space<smem>>
    %c0_i32_0 = arith.constant 0 : i32
    %c511_i32 = arith.constant 511 : i32
    %4 = arith.maxsi %c0_i32_0, %3 : i32
    %5 = arith.minsi %c511_i32, %4 : i32
    %c1_i32 = arith.constant 1 : i32
    %6 = arith.addi %0, %c1_i32 : i32
    %7 = arith.index_cast %6 : i32 to index
    %8 = memref.load %arg1[%7] : memref<16xi32, #tpu.memory_space<smem>>
    %c0_i32_1 = arith.constant 0 : i32
    %c511_i32_2 = arith.constant 511 : i32
    %9 = arith.maxsi %c0_i32_1, %8 : i32
    %10 = arith.minsi %c511_i32_2, %9 : i32
    %c2_i32 = arith.constant 2 : i32
    %11 = arith.addi %0, %c2_i32 : i32
    %12 = arith.index_cast %11 : i32 to index
    %13 = memref.load %arg1[%12] : memref<16xi32, #tpu.memory_space<smem>>
    %c0_i32_3 = arith.constant 0 : i32
    %c511_i32_4 = arith.constant 511 : i32
    %14 = arith.maxsi %c0_i32_3, %13 : i32
    %15 = arith.minsi %c511_i32_4, %14 : i32
    %c3_i32 = arith.constant 3 : i32
    %16 = arith.addi %0, %c3_i32 : i32
    %17 = arith.index_cast %16 : i32 to index
    %18 = memref.load %arg1[%17] : memref<16xi32, #tpu.memory_space<smem>>
    %c0_i32_5 = arith.constant 0 : i32
    %c511_i32_6 = arith.constant 511 : i32
    %19 = arith.maxsi %c0_i32_5, %18 : i32
    %20 = arith.minsi %c511_i32_6, %19 : i32
    %c4_i32 = arith.constant 4 : i32
    %21 = arith.addi %0, %c4_i32 : i32
    %22 = arith.index_cast %21 : i32 to index
    %23 = memref.load %arg1[%22] : memref<16xi32, #tpu.memory_space<smem>>
    %c0_i32_7 = arith.constant 0 : i32
    %c511_i32_8 = arith.constant 511 : i32
    %24 = arith.maxsi %c0_i32_7, %23 : i32
    %25 = arith.minsi %c511_i32_8, %24 : i32
    %c5_i32 = arith.constant 5 : i32
    %26 = arith.addi %0, %c5_i32 : i32
    %27 = arith.index_cast %26 : i32 to index
    %28 = memref.load %arg1[%27] : memref<16xi32, #tpu.memory_space<smem>>
    %c0_i32_9 = arith.constant 0 : i32
    %c511_i32_10 = arith.constant 511 : i32
    %29 = arith.maxsi %c0_i32_9, %28 : i32
    %30 = arith.minsi %c511_i32_10, %29 : i32
    %c6_i32 = arith.constant 6 : i32
    %31 = arith.addi %0, %c6_i32 : i32
    %32 = arith.index_cast %31 : i32 to index
    %33 = memref.load %arg1[%32] : memref<16xi32, #tpu.memory_space<smem>>
    %c0_i32_11 = arith.constant 0 : i32
    %c511_i32_12 = arith.constant 511 : i32
    %34 = arith.maxsi %c0_i32_11, %33 : i32
    %35 = arith.minsi %c511_i32_12, %34 : i32
    %c7_i32 = arith.constant 7 : i32
    %36 = arith.addi %0, %c7_i32 : i32
    %37 = arith.index_cast %36 : i32 to index
    %38 = memref.load %arg1[%37] : memref<16xi32, #tpu.memory_space<smem>>
    %c0_i32_13 = arith.constant 0 : i32
    %c511_i32_14 = arith.constant 511 : i32
    %39 = arith.maxsi %c0_i32_13, %38 : i32
    %40 = arith.minsi %c511_i32_14, %39 : i32
    %c0_i32_15 = arith.constant 0 : i32
    %c0_i32_16 = arith.constant 0 : i32
    %41 = tpu.memref_slice %arg2[%5, %c0_i32_16] : memref<512x128xf32, #tpu.memory_space<any>> -> memref<1x128xf32, #tpu.memory_space<any>>
    %c0_i32_17 = arith.constant 0 : i32
    %c0_i32_18 = arith.constant 0 : i32
    %42 = tpu.memref_slice %arg3[%c0_i32_17, %c0_i32_18] : memref<8x128xf32, #tpu.memory_space<vmem>> -> memref<1x128xf32, #tpu.memory_space<vmem>>
    %43 = tpu.memref_slice %arg4[%c0_i32_15] : memref<8x!tpu.dma_semaphore, #tpu.memory_space<semaphore_mem>> -> memref<1x!tpu.dma_semaphore, #tpu.memory_space<semaphore_mem>>
    %44 = tpu.memref_squeeze %43 : memref<1x!tpu.dma_semaphore, #tpu.memory_space<semaphore_mem>> -> memref<!tpu.dma_semaphore, #tpu.memory_space<semaphore_mem>>
    tpu.enqueue_dma source(%41 : memref<1x128xf32, #tpu.memory_space<any>>) target(%42 : memref<1x128xf32, #tpu.memory_space<vmem>>) target_semaphore(%44 : memref<!tpu.dma_semaphore, #tpu.memory_space<semaphore_mem>>)
    %c1_i32_19 = arith.constant 1 : i32
    %c0_i32_20 = arith.constant 0 : i32
    %45 = tpu.memref_slice %arg2[%10, %c0_i32_20] : memref<512x128xf32, #tpu.memory_space<any>> -> memref<1x128xf32, #tpu.memory_space<any>>
    %c1_i32_21 = arith.constant 1 : i32
    %c0_i32_22 = arith.constant 0 : i32
    %46 = tpu.memref_slice %arg3[%c1_i32_21, %c0_i32_22] : memref<8x128xf32, #tpu.memory_space<vmem>> -> memref<1x128xf32, #tpu.memory_space<vmem>>
    %47 = tpu.memref_slice %arg4[%c1_i32_19] : memref<8x!tpu.dma_semaphore, #tpu.memory_space<semaphore_mem>> -> memref<1x!tpu.dma_semaphore, #tpu.memory_space<semaphore_mem>>
    %48 = tpu.memref_squeeze %47 : memref<1x!tpu.dma_semaphore, #tpu.memory_space<semaphore_mem>> -> memref<!tpu.dma_semaphore, #tpu.memory_space<semaphore_mem>>
    tpu.enqueue_dma source(%45 : memref<1x128xf32, #tpu.memory_space<any>>) target(%46 : memref<1x128xf32, #tpu.memory_space<vmem>>) target_semaphore(%48 : memref<!tpu.dma_semaphore, #tpu.memory_space<semaphore_mem>>)
    %c2_i32_23 = arith.constant 2 : i32
    %c0_i32_24 = arith.constant 0 : i32
    %49 = tpu.memref_slice %arg2[%15, %c0_i32_24] : memref<512x128xf32, #tpu.memory_space<any>> -> memref<1x128xf32, #tpu.memory_space<any>>
    %c2_i32_25 = arith.constant 2 : i32
    %c0_i32_26 = arith.constant 0 : i32
    %50 = tpu.memref_slice %arg3[%c2_i32_25, %c0_i32_26] : memref<8x128xf32, #tpu.memory_space<vmem>> -> memref<1x128xf32, #tpu.memory_space<vmem>>
    %51 = tpu.memref_slice %arg4[%c2_i32_23] : memref<8x!tpu.dma_semaphore, #tpu.memory_space<semaphore_mem>> -> memref<1x!tpu.dma_semaphore, #tpu.memory_space<semaphore_mem>>
    %52 = tpu.memref_squeeze %51 : memref<1x!tpu.dma_semaphore, #tpu.memory_space<semaphore_mem>> -> memref<!tpu.dma_semaphore, #tpu.memory_space<semaphore_mem>>
    tpu.enqueue_dma source(%49 : memref<1x128xf32, #tpu.memory_space<any>>) target(%50 : memref<1x128xf32, #tpu.memory_space<vmem>>) target_semaphore(%52 : memref<!tpu.dma_semaphore, #tpu.memory_space<semaphore_mem>>)
    %c3_i32_27 = arith.constant 3 : i32
    %c0_i32_28 = arith.constant 0 : i32
    %53 = tpu.memref_slice %arg2[%20, %c0_i32_28] : memref<512x128xf32, #tpu.memory_space<any>> -> memref<1x128xf32, #tpu.memory_space<any>>
    %c3_i32_29 = arith.constant 3 : i32
    %c0_i32_30 = arith.constant 0 : i32
    %54 = tpu.memref_slice %arg3[%c3_i32_29, %c0_i32_30] : memref<8x128xf32, #tpu.memory_space<vmem>> -> memref<1x128xf32, #tpu.memory_space<vmem>>
    %55 = tpu.memref_slice %arg4[%c3_i32_27] : memref<8x!tpu.dma_semaphore, #tpu.memory_space<semaphore_mem>> -> memref<1x!tpu.dma_semaphore, #tpu.memory_space<semaphore_mem>>
    %56 = tpu.memref_squeeze %55 : memref<1x!tpu.dma_semaphore, #tpu.memory_space<semaphore_mem>> -> memref<!tpu.dma_semaphore, #tpu.memory_space<semaphore_mem>>
    tpu.enqueue_dma source(%53 : memref<1x128xf32, #tpu.memory_space<any>>) target(%54 : memref<1x128xf32, #tpu.memory_space<vmem>>) target_semaphore(%56 : memref<!tpu.dma_semaphore, #tpu.memory_space<semaphore_mem>>)
    %c4_i32_31 = arith.constant 4 : i32
    %c0_i32_32 = arith.constant 0 : i32
    %57 = tpu.memref_slice %arg2[%25, %c0_i32_32] : memref<512x128xf32, #tpu.memory_space<any>> -> memref<1x128xf32, #tpu.memory_space<any>>
    %c4_i32_33 = arith.constant 4 : i32
    %c0_i32_34 = arith.constant 0 : i32
    %58 = tpu.memref_slice %arg3[%c4_i32_33, %c0_i32_34] : memref<8x128xf32, #tpu.memory_space<vmem>> -> memref<1x128xf32, #tpu.memory_space<vmem>>
    %59 = tpu.memref_slice %arg4[%c4_i32_31] : memref<8x!tpu.dma_semaphore, #tpu.memory_space<semaphore_mem>> -> memref<1x!tpu.dma_semaphore, #tpu.memory_space<semaphore_mem>>
    %60 = tpu.memref_squeeze %59 : memref<1x!tpu.dma_semaphore, #tpu.memory_space<semaphore_mem>> -> memref<!tpu.dma_semaphore, #tpu.memory_space<semaphore_mem>>
    tpu.enqueue_dma source(%57 : memref<1x128xf32, #tpu.memory_space<any>>) target(%58 : memref<1x128xf32, #tpu.memory_space<vmem>>) target_semaphore(%60 : memref<!tpu.dma_semaphore, #tpu.memory_space<semaphore_mem>>)
    %c5_i32_35 = arith.constant 5 : i32
    %c0_i32_36 = arith.constant 0 : i32
    %61 = tpu.memref_slice %arg2[%30, %c0_i32_36] : memref<512x128xf32, #tpu.memory_space<any>> -> memref<1x128xf32, #tpu.memory_space<any>>
    %c5_i32_37 = arith.constant 5 : i32
    %c0_i32_38 = arith.constant 0 : i32
    %62 = tpu.memref_slice %arg3[%c5_i32_37, %c0_i32_38] : memref<8x128xf32, #tpu.memory_space<vmem>> -> memref<1x128xf32, #tpu.memory_space<vmem>>
    %63 = tpu.memref_slice %arg4[%c5_i32_35] : memref<8x!tpu.dma_semaphore, #tpu.memory_space<semaphore_mem>> -> memref<1x!tpu.dma_semaphore, #tpu.memory_space<semaphore_mem>>
    %64 = tpu.memref_squeeze %63 : memref<1x!tpu.dma_semaphore, #tpu.memory_space<semaphore_mem>> -> memref<!tpu.dma_semaphore, #tpu.memory_space<semaphore_mem>>
    tpu.enqueue_dma source(%61 : memref<1x128xf32, #tpu.memory_space<any>>) target(%62 : memref<1x128xf32, #tpu.memory_space<vmem>>) target_semaphore(%64 : memref<!tpu.dma_semaphore, #tpu.memory_space<semaphore_mem>>)
    %c6_i32_39 = arith.constant 6 : i32
    %c0_i32_40 = arith.constant 0 : i32
    %65 = tpu.memref_slice %arg2[%35, %c0_i32_40] : memref<512x128xf32, #tpu.memory_space<any>> -> memref<1x128xf32, #tpu.memory_space<any>>
    %c6_i32_41 = arith.constant 6 : i32
    %c0_i32_42 = arith.constant 0 : i32
    %66 = tpu.memref_slice %arg3[%c6_i32_41, %c0_i32_42] : memref<8x128xf32, #tpu.memory_space<vmem>> -> memref<1x128xf32, #tpu.memory_space<vmem>>
    %67 = tpu.memref_slice %arg4[%c6_i32_39] : memref<8x!tpu.dma_semaphore, #tpu.memory_space<semaphore_mem>> -> memref<1x!tpu.dma_semaphore, #tpu.memory_space<semaphore_mem>>
    %68 = tpu.memref_squeeze %67 : memref<1x!tpu.dma_semaphore, #tpu.memory_space<semaphore_mem>> -> memref<!tpu.dma_semaphore, #tpu.memory_space<semaphore_mem>>
    tpu.enqueue_dma source(%65 : memref<1x128xf32, #tpu.memory_space<any>>) target(%66 : memref<1x128xf32, #tpu.memory_space<vmem>>) target_semaphore(%68 : memref<!tpu.dma_semaphore, #tpu.memory_space<semaphore_mem>>)
    %c7_i32_43 = arith.constant 7 : i32
    %c0_i32_44 = arith.constant 0 : i32
    %69 = tpu.memref_slice %arg2[%40, %c0_i32_44] : memref<512x128xf32, #tpu.memory_space<any>> -> memref<1x128xf32, #tpu.memory_space<any>>
    %c7_i32_45 = arith.constant 7 : i32
    %c0_i32_46 = arith.constant 0 : i32
    %70 = tpu.memref_slice %arg3[%c7_i32_45, %c0_i32_46] : memref<8x128xf32, #tpu.memory_space<vmem>> -> memref<1x128xf32, #tpu.memory_space<vmem>>
    %71 = tpu.memref_slice %arg4[%c7_i32_43] : memref<8x!tpu.dma_semaphore, #tpu.memory_space<semaphore_mem>> -> memref<1x!tpu.dma_semaphore, #tpu.memory_space<semaphore_mem>>
    %72 = tpu.memref_squeeze %71 : memref<1x!tpu.dma_semaphore, #tpu.memory_space<semaphore_mem>> -> memref<!tpu.dma_semaphore, #tpu.memory_space<semaphore_mem>>
    tpu.enqueue_dma source(%69 : memref<1x128xf32, #tpu.memory_space<any>>) target(%70 : memref<1x128xf32, #tpu.memory_space<vmem>>) target_semaphore(%72 : memref<!tpu.dma_semaphore, #tpu.memory_space<semaphore_mem>>)
    %c0_i32_47 = arith.constant 0 : i32
    %c0_i32_48 = arith.constant 0 : i32
    %73 = tpu.memref_slice %arg2[%5, %c0_i32_48] : memref<512x128xf32, #tpu.memory_space<any>> -> memref<1x128xf32, #tpu.memory_space<any>>
    %c0_i32_49 = arith.constant 0 : i32
    %c0_i32_50 = arith.constant 0 : i32
    %74 = tpu.memref_slice %arg3[%c0_i32_49, %c0_i32_50] : memref<8x128xf32, #tpu.memory_space<vmem>> -> memref<1x128xf32, #tpu.memory_space<vmem>>
    %75 = tpu.memref_slice %arg4[%c0_i32_47] : memref<8x!tpu.dma_semaphore, #tpu.memory_space<semaphore_mem>> -> memref<1x!tpu.dma_semaphore, #tpu.memory_space<semaphore_mem>>
    %76 = tpu.memref_squeeze %75 : memref<1x!tpu.dma_semaphore, #tpu.memory_space<semaphore_mem>> -> memref<!tpu.dma_semaphore, #tpu.memory_space<semaphore_mem>>
    tpu.wait_dma2 semaphore(%76 : memref<!tpu.dma_semaphore, #tpu.memory_space<semaphore_mem>>) src(%73 : memref<1x128xf32, #tpu.memory_space<any>>) dst(%74 : memref<1x128xf32, #tpu.memory_space<vmem>>)
    %c1_i32_51 = arith.constant 1 : i32
    %c0_i32_52 = arith.constant 0 : i32
    %77 = tpu.memref_slice %arg2[%10, %c0_i32_52] : memref<512x128xf32, #tpu.memory_space<any>> -> memref<1x128xf32, #tpu.memory_space<any>>
    %c1_i32_53 = arith.constant 1 : i32
    %c0_i32_54 = arith.constant 0 : i32
    %78 = tpu.memref_slice %arg3[%c1_i32_53, %c0_i32_54] : memref<8x128xf32, #tpu.memory_space<vmem>> -> memref<1x128xf32, #tpu.memory_space<vmem>>
    %79 = tpu.memref_slice %arg4[%c1_i32_51] : memref<8x!tpu.dma_semaphore, #tpu.memory_space<semaphore_mem>> -> memref<1x!tpu.dma_semaphore, #tpu.memory_space<semaphore_mem>>
    %80 = tpu.memref_squeeze %79 : memref<1x!tpu.dma_semaphore, #tpu.memory_space<semaphore_mem>> -> memref<!tpu.dma_semaphore, #tpu.memory_space<semaphore_mem>>
    tpu.wait_dma2 semaphore(%80 : memref<!tpu.dma_semaphore, #tpu.memory_space<semaphore_mem>>) src(%77 : memref<1x128xf32, #tpu.memory_space<any>>) dst(%78 : memref<1x128xf32, #tpu.memory_space<vmem>>)
    %c2_i32_55 = arith.constant 2 : i32
    %c0_i32_56 = arith.constant 0 : i32
    %81 = tpu.memref_slice %arg2[%15, %c0_i32_56] : memref<512x128xf32, #tpu.memory_space<any>> -> memref<1x128xf32, #tpu.memory_space<any>>
    %c2_i32_57 = arith.constant 2 : i32
    %c0_i32_58 = arith.constant 0 : i32
    %82 = tpu.memref_slice %arg3[%c2_i32_57, %c0_i32_58] : memref<8x128xf32, #tpu.memory_space<vmem>> -> memref<1x128xf32, #tpu.memory_space<vmem>>
    %83 = tpu.memref_slice %arg4[%c2_i32_55] : memref<8x!tpu.dma_semaphore, #tpu.memory_space<semaphore_mem>> -> memref<1x!tpu.dma_semaphore, #tpu.memory_space<semaphore_mem>>
    %84 = tpu.memref_squeeze %83 : memref<1x!tpu.dma_semaphore, #tpu.memory_space<semaphore_mem>> -> memref<!tpu.dma_semaphore, #tpu.memory_space<semaphore_mem>>
    tpu.wait_dma2 semaphore(%84 : memref<!tpu.dma_semaphore, #tpu.memory_space<semaphore_mem>>) src(%81 : memref<1x128xf32, #tpu.memory_space<any>>) dst(%82 : memref<1x128xf32, #tpu.memory_space<vmem>>)
    %c3_i32_59 = arith.constant 3 : i32
    %c0_i32_60 = arith.constant 0 : i32
    %85 = tpu.memref_slice %arg2[%20, %c0_i32_60] : memref<512x128xf32, #tpu.memory_space<any>> -> memref<1x128xf32, #tpu.memory_space<any>>
    %c3_i32_61 = arith.constant 3 : i32
    %c0_i32_62 = arith.constant 0 : i32
    %86 = tpu.memref_slice %arg3[%c3_i32_61, %c0_i32_62] : memref<8x128xf32, #tpu.memory_space<vmem>> -> memref<1x128xf32, #tpu.memory_space<vmem>>
    %87 = tpu.memref_slice %arg4[%c3_i32_59] : memref<8x!tpu.dma_semaphore, #tpu.memory_space<semaphore_mem>> -> memref<1x!tpu.dma_semaphore, #tpu.memory_space<semaphore_mem>>
    %88 = tpu.memref_squeeze %87 : memref<1x!tpu.dma_semaphore, #tpu.memory_space<semaphore_mem>> -> memref<!tpu.dma_semaphore, #tpu.memory_space<semaphore_mem>>
    tpu.wait_dma2 semaphore(%88 : memref<!tpu.dma_semaphore, #tpu.memory_space<semaphore_mem>>) src(%85 : memref<1x128xf32, #tpu.memory_space<any>>) dst(%86 : memref<1x128xf32, #tpu.memory_space<vmem>>)
    %c4_i32_63 = arith.constant 4 : i32
    %c0_i32_64 = arith.constant 0 : i32
    %89 = tpu.memref_slice %arg2[%25, %c0_i32_64] : memref<512x128xf32, #tpu.memory_space<any>> -> memref<1x128xf32, #tpu.memory_space<any>>
    %c4_i32_65 = arith.constant 4 : i32
    %c0_i32_66 = arith.constant 0 : i32
    %90 = tpu.memref_slice %arg3[%c4_i32_65, %c0_i32_66] : memref<8x128xf32, #tpu.memory_space<vmem>> -> memref<1x128xf32, #tpu.memory_space<vmem>>
    %91 = tpu.memref_slice %arg4[%c4_i32_63] : memref<8x!tpu.dma_semaphore, #tpu.memory_space<semaphore_mem>> -> memref<1x!tpu.dma_semaphore, #tpu.memory_space<semaphore_mem>>
    %92 = tpu.memref_squeeze %91 : memref<1x!tpu.dma_semaphore, #tpu.memory_space<semaphore_mem>> -> memref<!tpu.dma_semaphore, #tpu.memory_space<semaphore_mem>>
    tpu.wait_dma2 semaphore(%92 : memref<!tpu.dma_semaphore, #tpu.memory_space<semaphore_mem>>) src(%89 : memref<1x128xf32, #tpu.memory_space<any>>) dst(%90 : memref<1x128xf32, #tpu.memory_space<vmem>>)
    %c5_i32_67 = arith.constant 5 : i32
    %c0_i32_68 = arith.constant 0 : i32
    %93 = tpu.memref_slice %arg2[%30, %c0_i32_68] : memref<512x128xf32, #tpu.memory_space<any>> -> memref<1x128xf32, #tpu.memory_space<any>>
    %c5_i32_69 = arith.constant 5 : i32
    %c0_i32_70 = arith.constant 0 : i32
    %94 = tpu.memref_slice %arg3[%c5_i32_69, %c0_i32_70] : memref<8x128xf32, #tpu.memory_space<vmem>> -> memref<1x128xf32, #tpu.memory_space<vmem>>
    %95 = tpu.memref_slice %arg4[%c5_i32_67] : memref<8x!tpu.dma_semaphore, #tpu.memory_space<semaphore_mem>> -> memref<1x!tpu.dma_semaphore, #tpu.memory_space<semaphore_mem>>
    %96 = tpu.memref_squeeze %95 : memref<1x!tpu.dma_semaphore, #tpu.memory_space<semaphore_mem>> -> memref<!tpu.dma_semaphore, #tpu.memory_space<semaphore_mem>>
    tpu.wait_dma2 semaphore(%96 : memref<!tpu.dma_semaphore, #tpu.memory_space<semaphore_mem>>) src(%93 : memref<1x128xf32, #tpu.memory_space<any>>) dst(%94 : memref<1x128xf32, #tpu.memory_space<vmem>>)
    %c6_i32_71 = arith.constant 6 : i32
    %c0_i32_72 = arith.constant 0 : i32
    %97 = tpu.memref_slice %arg2[%35, %c0_i32_72] : memref<512x128xf32, #tpu.memory_space<any>> -> memref<1x128xf32, #tpu.memory_space<any>>
    %c6_i32_73 = arith.constant 6 : i32
    %c0_i32_74 = arith.constant 0 : i32
    %98 = tpu.memref_slice %arg3[%c6_i32_73, %c0_i32_74] : memref<8x128xf32, #tpu.memory_space<vmem>> -> memref<1x128xf32, #tpu.memory_space<vmem>>
    %99 = tpu.memref_slice %arg4[%c6_i32_71] : memref<8x!tpu.dma_semaphore, #tpu.memory_space<semaphore_mem>> -> memref<1x!tpu.dma_semaphore, #tpu.memory_space<semaphore_mem>>
    %100 = tpu.memref_squeeze %99 : memref<1x!tpu.dma_semaphore, #tpu.memory_space<semaphore_mem>> -> memref<!tpu.dma_semaphore, #tpu.memory_space<semaphore_mem>>
    tpu.wait_dma2 semaphore(%100 : memref<!tpu.dma_semaphore, #tpu.memory_space<semaphore_mem>>) src(%97 : memref<1x128xf32, #tpu.memory_space<any>>) dst(%98 : memref<1x128xf32, #tpu.memory_space<vmem>>)
    %c7_i32_75 = arith.constant 7 : i32
    %c0_i32_76 = arith.constant 0 : i32
    %101 = tpu.memref_slice %arg2[%40, %c0_i32_76] : memref<512x128xf32, #tpu.memory_space<any>> -> memref<1x128xf32, #tpu.memory_space<any>>
    %c7_i32_77 = arith.constant 7 : i32
    %c0_i32_78 = arith.constant 0 : i32
    %102 = tpu.memref_slice %arg3[%c7_i32_77, %c0_i32_78] : memref<8x128xf32, #tpu.memory_space<vmem>> -> memref<1x128xf32, #tpu.memory_space<vmem>>
    %103 = tpu.memref_slice %arg4[%c7_i32_75] : memref<8x!tpu.dma_semaphore, #tpu.memory_space<semaphore_mem>> -> memref<1x!tpu.dma_semaphore, #tpu.memory_space<semaphore_mem>>
    %104 = tpu.memref_squeeze %103 : memref<1x!tpu.dma_semaphore, #tpu.memory_space<semaphore_mem>> -> memref<!tpu.dma_semaphore, #tpu.memory_space<semaphore_mem>>
    tpu.wait_dma2 semaphore(%104 : memref<!tpu.dma_semaphore, #tpu.memory_space<semaphore_mem>>) src(%101 : memref<1x128xf32, #tpu.memory_space<any>>) dst(%102 : memref<1x128xf32, #tpu.memory_space<vmem>>)
    return
  }
  func.func @transform_1(%arg0: i32, %arg1: memref<16xi32, #tpu.memory_space<smem>>) -> (i32, i32) {
    %c0_i32 = arith.constant 0 : i32
    %c0_i32_0 = arith.constant 0 : i32
    return %arg0, %c0_i32 : i32, i32
  }
}

</mosaic_0001>

<bundles_post_ra>
// kernel: tpu_custom_call.1
= control target key start
LH: loop header
LB: loop body
LE: loop exit
PB: predicated region body
PF: predicated region fallthrough
CT: control target
= control target key end

     0   :  { %s819_s9 = smov [#allocation4]   ;;  %s1225_s0 = inlined_call_operand.hbm [shape: s32[16], index: 0, kind: input, shape index: {}]   ;;  %s1226_s1 = inlined_call_operand.hbm [shape: f32[512,128], index: 1, kind: input, shape index: {}]   ;;  %s1227_s2 = inlined_call_operand.hbm [shape: f32[16,128], index: 2, kind: output, shape index: {}]  }
   0x1   :  { %8 = dma.hbm_to_smem %s1225_s0, 16, %s819_s9, [#allocation3] }
   0x2   :  { %769 = dma.done.wait [#allocation3], 16 }
   0x3   :  { %770 = vsyncadd [#allocation3], 4294967280 }
   0x4   :  { %10 = sfence }
   0x5   :  { %11 = vsyncpa [#allocation6], 0 }
   0x6   :  { %13 = vsyncpa [#allocation6 + $0x1], 0  ;;  %s839_s12 = smov 0   ;;  %s841_s13 = smov 0  }
   0x7   :  { %s843_s14 = smov 0  }
   0x8 LB: > { %s363_s0 = sadd.s32 4294967295, %s817_s14   ;;  %s856_s15 = sadd.s32 1, %s817_s14   ;;  %s817_s14 = sphi %s843_s14, %s1242_s14   ;;  %s813_s13 = sphi %s841_s13, %s1241_s13   ;;  %s809_s12 = sphi %s839_s12, %s1240_s12  }
   0x9   : > { %s22_s16 = ssub.s32 %s817_s14, %s856_s15  ;;  %s25_s17 = sadd.s32 1, %s813_s13 }
   0xa   : > { %p23_p0 = scmp.eq.s32.totalorder %s22_s16, 0  ;;  %p364_p1 = scmp.ne.s32.totalorder %s22_s16, 0 }
   0xb   : > { %p29_p2 = scmp.eq.s32.totalorder %s817_s14, 1  ;;  %p34_p3 = scmp.ne.s32.totalorder %s813_s13, %s809_s12 }
   0xc   : > { %s865_s18 = scalar_select %p23_p0, %s813_s13, %s25_s17  }
   0xd   : > { %p867_p4 = por %p364_p1, %p29_p2  ;;  %p35_p5 = scmp.eq.s32.totalorder %s363_s0, 1 }
   0xe   : > { %p486_p6 = scmp.lt.s32.totalorder %s817_s14, 2  ;;  %s49_s21 = sand.u32 1, %s813_s13  }
   0xf   : > { %p872_p7 = por %p35_p5, %p34_p3  ;;  %s366_s22 = sshll.u32 %s49_s21, 3 }
  0x10   : > { %s880_s23 = sshll.u32 %s817_s14, 3  ;;  %s887_s26 = scalar_lea.vmem [#allocation5], %s366_s22 }
  0x11   : > { %s1230_s20 = scalar_select %p872_p7, 1, 0 }
  0x12   : > { %s447_s24 = scalar_select %p486_p6, [#allocation4], [#allocation25] }
  0x13   : > { %s448_s25 = scalar_select %p486_p6, %s880_s23, 0 }
  0x14   : > { %s109_s27 = sshll.u32 %s887_s26, 4  ;;  %s58_s28 = sadd.s32 1, %s880_s23  ;;  %s896_s27 = int_to_ptr.vmem [resolvable:$true] %s109_s27 }
  0x15   : > { %s53_s29 = sld [smem:[%s447_s24 + %s448_s25]]  ;;  %s115_s30 = scalar_lea.vmem %s887_s26, 1 [#allocation5] }
  0x16   : > { %s449_s3 = scalar_select %p486_p6, [#allocation4], [#allocation26] }
  0x17   : > { %s1244_s28 = smov (!%p486_p6, %s58_s28), 0  ;;  %s124_s4 = sshll.u32 %s115_s30, 4  ;;  %s909_s4 = int_to_ptr.vmem [resolvable:$true] %s124_s4 }
  0x18   : > { %s898_s5 = sld [smem:[%s449_s3 + %s1244_s28]]  ;;  %s64_s6 = sadd.s32 2, %s880_s23 }
  0x19   : > { %s451_s7 = scalar_select %p486_p6, [#allocation4], [#allocation27] }
  0x1a   : > { %s1246_s6 = smov (!%p486_p6, %s64_s6), 0  ;;  %s130_s9 = scalar_lea.vmem %s887_s26, 2 [#allocation5] }
  0x1b   : > { %p54_p8 = scmp.gt.s32.totalorder %s53_s29, 0  ;;  %p368_p9 = scmp.lt.s32.totalorder %s53_s29, 511 }
  0x1c   : > { %s905_s8 = sld [smem:[%s451_s7 + %s1246_s6]]  ;;  %s915_s17 = sshll.u32 %s130_s9, 4  ;;  %s958_s17 = int_to_ptr.vmem [resolvable:$true] %s915_s17 }
  0x1d   : > { %s1248_s29 = smov (!%p54_p8, %s53_s29), 0  ;;  %s922_s28 = scalar_lea.hbm %s1226_s1, 8192 }
  0x1e   : > { %s1250_s29 = smov (!%p368_p9, %s1248_s29), 511  ;;  %p60_p10 = scmp.gt.s32.totalorder %s898_s5, 0 }
  0x1f   : > { %s408_s10 = sshll.u32 %s1250_s29, 4  ;;  %p373_p11 = scmp.lt.s32.totalorder %s898_s5, 511 }
  0x20   : > { %s101_s16 = scalar_lea.hbm %s1226_s1, %s408_s10 }
  0x21   : > { %s521_s22 = scalar_lea.hbm %s101_s16, 16  ;;  %p526_p1 = scmp.lt.s32.totalorder %s101_s16, %s1226_s1 }
  0x22   : > { %p522_p12 = scmp.ne.s32.totalorder %s101_s16, %s521_s22  ;;  %p527_p2 = scmp.lt.s32.totalorder %s922_s28, %s521_s22 }
  0x24   : > { %p523_p13 = pnand %p522_p12, %p486_p6  ;;  %p528_p3 = por %p527_p2, %p526_p1 }
  0x26   : > { %p524_p0 = pneg %p523_p13 }
  0x28   : > { %p529_p5 = pnand %p528_p3, %p524_p0 }
  0x2a   : > { %532 = shalt.err (!%p529_p5)  }
  0x2b   : > { %s533_s29 = scalar_lea.vmem %s896_s27, 16  ;;  %s820_s6 = smov [#allocation5]  }
  0x2c   : > { %p534_p8 = scmp.ne.s32.totalorder %s896_s27, %s533_s29  ;;  %s537_s7 = sshll.u32 %s820_s6, 4  ;;  %s932_s7 = int_to_ptr.vmem [resolvable:$false] %s537_s7 }
  0x2d   : > { %s935_s9 = scalar_lea.vmem %s932_s7, 256  ;;  %p1228_p13 = scmp.lt.s32.totalorder %s896_s27, %s932_s7 }
  0x2e   : > { %p535_p9 = pnand %p534_p8, %p486_p6  ;;  %p541_p0 = scmp.lt.s32.totalorder %s935_s9, %s533_s29 }
  0x30   : > { %p536_p12 = pneg %p535_p9  ;;  %p542_p1 = por %p541_p0, %p1228_p13 }
  0x32   : > { %p543_p2 = pnand %p542_p1, %p536_p12 }
  0x34   : > { %546 = shalt.err (!%p543_p2)  }
  0x35   : > { %463 = dma.hbm_to_vmem [thread:$0]  (%p486_p6), %s101_s16, 16, %s896_s27, [#allocation2] }
  0x36   : > { %s61_s10 = scalar_select %p60_p10, %s898_s5, 0 }
  0x37   : > { %p66_p3 = scmp.gt.s32.totalorder %s905_s8, 0 }
  0x38   : > { %s1252_s10 = smov (!%p373_p11, %s61_s10), 511 }
  0x39   : > { %s67_s11 = scalar_select %p66_p3, %s905_s8, 0 }
  0x3a   : > { %s409_s0 = sshll.u32 %s1252_s10, 4 }
  0x3b   : > { %s114_s25 = scalar_lea.hbm %s1226_s1, %s409_s0 }
  0x3c   : > { %s547_s30 = scalar_lea.hbm %s114_s25, 16  ;;  %p552_p10 = scmp.lt.s32.totalorder %s114_s25, %s1226_s1 }
  0x3d   : > { %p548_p8 = scmp.ne.s32.totalorder %s114_s25, %s547_s30  ;;  %p553_p0 = scmp.lt.s32.totalorder %s922_s28, %s547_s30 }
  0x3f   : > { %p549_p9 = pnand %p548_p8, %p486_p6  ;;  %p554_p1 = por %p553_p0, %p552_p10 }
  0x41   : > { %p550_p12 = pneg %p549_p9 }
  0x43   : > { %p555_p11 = pnand %p554_p1, %p550_p12 }
  0x45   : > { %558 = shalt.err (!%p555_p11)  }
  0x46   : > { %s559_s5 = scalar_lea.vmem %s909_s4, 16  ;;  %p566_p9 = scmp.lt.s32.totalorder %s909_s4, %s932_s7 }
  0x47   : > { %p560_p2 = scmp.ne.s32.totalorder %s909_s4, %s559_s5  ;;  %p567_p13 = scmp.lt.s32.totalorder %s935_s9, %s559_s5 }
  0x49   : > { %p561_p3 = pnand %p560_p2, %p486_p6  ;;  %p568_p5 = por %p567_p13, %p566_p9 }
  0x4b   : > { %p562_p8 = pneg %p561_p3 }
  0x4d   : > { %p569_p7 = pnand %p568_p5, %p562_p8 }
  0x4f   : > { %572 = shalt.err (!%p569_p7)  }
  0x50   : > { %464 = dma.hbm_to_vmem [thread:$0]  (%p486_p6), %s114_s25, 16, %s909_s4, [#allocation2 + $0x1] }
  0x51   : > { %p1231_p12 = scmp.lt.s32.totalorder %s905_s8, 511  ;;  %s70_s10 = sadd.s32 3, %s880_s23 }
  0x52   : > { %s453_s29 = scalar_select %p486_p6, [#allocation4], [#allocation28] }
  0x53   : > { %s1254_s11 = smov (!%p1231_p12, %s67_s11), 511  ;;  %s145_s30 = scalar_lea.vmem %s887_s26, 3 [#allocation5] }
  0x54   : > { %s410_s6 = sshll.u32 %s1254_s11, 4 }
  0x55   : > { %s129_s24 = scalar_lea.hbm %s1226_s1, %s410_s6 }
  0x56   : > { %s573_s16 = scalar_lea.hbm %s129_s24, 16  ;;  %p578_p10 = scmp.lt.s32.totalorder %s129_s24, %s1226_s1 }
  0x57   : > { %p574_p7 = scmp.ne.s32.totalorder %s129_s24, %s573_s16  ;;  %p579_p0 = scmp.lt.s32.totalorder %s922_s28, %s573_s16 }
  0x59   : > { %p575_p13 = pnand %p574_p7, %p486_p6  ;;  %p580_p1 = por %p579_p0, %p578_p10 }
  0x5b   : > { %p576_p5 = pneg %p575_p13 }
  0x5d   : > { %p581_p11 = pnand %p580_p1, %p576_p5 }
  0x5f   : > { %584 = shalt.err (!%p581_p11)  }
  0x60   : > { %s585_s4 = scalar_lea.vmem %s958_s17, 16  ;;  %p592_p9 = scmp.lt.s32.totalorder %s958_s17, %s932_s7 }
  0x61   : > { %p586_p2 = scmp.ne.s32.totalorder %s958_s17, %s585_s4  ;;  %p593_p12 = scmp.lt.s32.totalorder %s935_s9, %s585_s4 }
  0x63   : > { %p587_p3 = pnand %p586_p2, %p486_p6  ;;  %p594_p7 = por %p593_p12, %p592_p9 }
  0x65   : > { %p588_p8 = pneg %p587_p3 }
  0x67   : > { %p595_p13 = pnand %p594_p7, %p588_p8 }
  0x69   : > { %598 = shalt.err (!%p595_p13)  }
  0x6a   : > { %465 = dma.hbm_to_vmem [thread:$0]  (%p486_p6), %s129_s24, 16, %s958_s17, [#allocation2 + $0x2] }
  0x6b   : > { %s1256_s10 = smov (!%p486_p6, %s70_s10), 0  ;;  %s154_s8 = sshll.u32 %s145_s30, 4  ;;  %s1009_s8 = int_to_ptr.vmem [resolvable:$true] %s154_s8 }
  0x6c   : > { %s76_s11 = sadd.s32 4, %s880_s23  ;;  %s71_s25 = sld [smem:[%s453_s29 + %s1256_s10]] }
  0x6d   : > { %s160_s6 = scalar_lea.vmem %s887_s26, 4 [#allocation5]  ;;  %s1258_s11 = smov (!%p486_p6, %s76_s11), 0 }
  0x6e   : > { %s455_s0 = scalar_select %p486_p6, [#allocation4], [#allocation29] }
  0x6f   : > { %s169_s22 = sshll.u32 %s160_s6, 4  ;;  %s82_s3 = sadd.s32 5, %s880_s23  ;;  %s1022_s22 = int_to_ptr.vmem [resolvable:$true] %s169_s22 }
  0x70   : > { %s1011_s16 = sld [smem:[%s455_s0 + %s1258_s11]]  ;;  %s1260_s3 = smov (!%p486_p6, %s82_s3), 0 }
  0x71   : > { %s457_s17 = scalar_select %p486_p6, [#allocation4], [#allocation30] }
  0x72   : > { %p72_p5 = scmp.gt.s32.totalorder %s71_s25, 0  ;;  %p383_p10 = scmp.lt.s32.totalorder %s71_s25, 511 }
  0x73   : > { %s1018_s29 = sld [smem:[%s457_s17 + %s1260_s3]]  ;;  %s175_s10 = scalar_lea.vmem %s887_s26, 5 [#allocation5] }
  0x74   : > { %s1262_s25 = smov (!%p72_p5, %s71_s25), 0  ;;  %s1024_s30 = sshll.u32 %s175_s10, 4  ;;  %s1058_s30 = int_to_ptr.vmem [resolvable:$true] %s1024_s30 }
  0x75   : > { %s1264_s25 = smov (!%p383_p10, %s1262_s25), 511 }
  0x76   : > { %s411_s24 = sshll.u32 %s1264_s25, 4 }
  0x77   : > { %s144_s11 = scalar_lea.hbm %s1226_s1, %s411_s24 }
  0x78   : > { %s599_s6 = scalar_lea.hbm %s144_s11, 16  ;;  %p604_p8 = scmp.lt.s32.totalorder %s144_s11, %s1226_s1 }
  0x79   : > { %p600_p11 = scmp.ne.s32.totalorder %s144_s11, %s599_s6  ;;  %p605_p9 = scmp.lt.s32.totalorder %s922_s28, %s599_s6 }
  0x7b   : > { %p601_p2 = pnand %p600_p11, %p486_p6  ;;  %p606_p12 = por %p605_p9, %p604_p8 }
  0x7d   : > { %p602_p3 = pneg %p601_p2 }
  0x7f   : > { %p607_p7 = pnand %p606_p12, %p602_p3 }
  0x81   : > { %610 = shalt.err (!%p607_p7)  }
  0x82   : > { %s611_s25 = scalar_lea.vmem %s1009_s8, 16  ;;  %p618_p11 = scmp.lt.s32.totalorder %s1009_s8, %s932_s7 }
  0x83   : > { %p612_p13 = scmp.ne.s32.totalorder %s1009_s8, %s611_s25  ;;  %p619_p2 = scmp.lt.s32.totalorder %s935_s9, %s611_s25 }
  0x85   : > { %p613_p5 = pnand %p612_p13, %p486_p6  ;;  %p620_p1 = por %p619_p2, %p618_p11 }
  0x87   : > { %p614_p10 = pneg %p613_p5 }
  0x89   : > { %p621_p0 = pnand %p620_p1, %p614_p10 }
  0x8b   : > { %624 = shalt.err (!%p621_p0)  }
  0x8c   : > { %466 = dma.hbm_to_vmem [thread:$0]  (%p486_p6), %s144_s11, 16, %s1009_s8, [#allocation2 + $0x3] }
  0x8d   : > { %p1232_p3 = scmp.gt.s32.totalorder %s1011_s16, 0  ;;  %p84_p8 = scmp.gt.s32.totalorder %s1018_s29, 0 }
  0x8e   : > { %p1233_p12 = scmp.lt.s32.totalorder %s1011_s16, 511 }
  0x8f   : > { %s79_s17 = scalar_select %p1232_p3, %s1011_s16, 0 }
  0x90   : > { %s85_s10 = scalar_select %p84_p8, %s1018_s29, 0 }
  0x91   : > { %s1266_s17 = smov (!%p1233_p12, %s79_s17), 511 }
  0x92   : > { %s412_s24 = sshll.u32 %s1266_s17, 4 }
  0x93   : > { %s159_s6 = scalar_lea.hbm %s1226_s1, %s412_s24 }
  0x94   : > { %s625_s0 = scalar_lea.hbm %s159_s6, 16  ;;  %p630_p13 = scmp.lt.s32.totalorder %s159_s6, %s1226_s1 }
  0x95   : > { %p626_p0 = scmp.ne.s32.totalorder %s159_s6, %s625_s0  ;;  %p631_p5 = scmp.lt.s32.totalorder %s922_s28, %s625_s0 }
  0x97   : > { %p627_p1 = pnand %p626_p0, %p486_p6  ;;  %p632_p10 = por %p631_p5, %p630_p13 }
  0x99   : > { %p628_p7 = pneg %p627_p1 }
  0x9b   : > { %p633_p11 = pnand %p632_p10, %p628_p7 }
  0x9d   : > { %636 = shalt.err (!%p633_p11)  }
  0x9e   : > { %s637_s16 = scalar_lea.vmem %s1022_s22, 16  ;;  %p644_p12 = scmp.lt.s32.totalorder %s1022_s22, %s932_s7 }
  0x9f   : > { %p638_p2 = scmp.ne.s32.totalorder %s1022_s22, %s637_s16  ;;  %p645_p0 = scmp.lt.s32.totalorder %s935_s9, %s637_s16 }
  0xa1   : > { %p639_p3 = pnand %p638_p2, %p486_p6  ;;  %p646_p1 = por %p645_p0, %p644_p12 }
  0xa3   : > { %p640_p8 = pneg %p639_p3 }
  0xa5   : > { %p647_p9 = pnand %p646_p1, %p640_p8 }
  0xa7   : > { %650 = shalt.err (!%p647_p9)  }
  0xa8   : > { %467 = dma.hbm_to_vmem [thread:$0]  (%p486_p6), %s159_s6, 16, %s1022_s22, [#allocation2 + $0x4] }
  0xa9   : > { %p1234_p7 = scmp.lt.s32.totalorder %s1018_s29, 511  ;;  %s88_s17 = sadd.s32 6, %s880_s23 }
  0xaa   : > { %s459_s3 = scalar_select %p486_p6, [#allocation4], [#allocation31] }
  0xab   : > { %s1268_s10 = smov (!%p1234_p7, %s85_s10), 511  ;;  %s94_s0 = sadd.s32 7, %s880_s23 }
  0xac   : > { %s413_s25 = sshll.u32 %s1268_s10, 4 }
  0xad   : > { %s174_s4 = scalar_lea.hbm %s1226_s1, %s413_s25 }
  0xae   : > { %s651_s8 = scalar_lea.hbm %s174_s4, 16  ;;  %p656_p10 = scmp.lt.s32.totalorder %s174_s4, %s1226_s1 }
  0xaf   : > { %p652_p9 = scmp.ne.s32.totalorder %s174_s4, %s651_s8  ;;  %p657_p11 = scmp.lt.s32.totalorder %s922_s28, %s651_s8 }
  0xb1   : > { %p653_p13 = pnand %p652_p9, %p486_p6  ;;  %p658_p2 = por %p657_p11, %p656_p10 }
  0xb3   : > { %p654_p5 = pneg %p653_p13 }
  0xb5   : > { %p659_p3 = pnand %p658_p2, %p654_p5 }
  0xb7   : > { %662 = shalt.err (!%p659_p3)  }
  0xb8   : > { %s663_s23 = scalar_lea.vmem %s1058_s30, 16  ;;  %p670_p1 = scmp.lt.s32.totalorder %s1058_s30, %s932_s7 }
  0xb9   : > { %p664_p8 = scmp.ne.s32.totalorder %s1058_s30, %s663_s23  ;;  %p671_p7 = scmp.lt.s32.totalorder %s935_s9, %s663_s23 }
  0xbb   : > { %p665_p12 = pnand %p664_p8, %p486_p6  ;;  %p672_p9 = por %p671_p7, %p670_p1 }
  0xbd   : > { %p666_p0 = pneg %p665_p12 }
  0xbf   : > { %p673_p13 = pnand %p672_p9, %p666_p0 }
  0xc1   : > { %676 = shalt.err (!%p673_p13)  }
  0xc2   : > { %468 = dma.hbm_to_vmem [thread:$0]  (%p486_p6), %s174_s4, 16, %s1058_s30, [#allocation2 + $0x5] }
  0xc3   : > { %s1270_s17 = smov (!%p486_p6, %s88_s17), 0  ;;  %s190_s10 = scalar_lea.vmem %s887_s26, 6 [#allocation5] }
  0xc4   : > { %s461_s22 = scalar_select %p486_p6, [#allocation4], [#allocation32] }
  0xc5   : > { %s89_s29 = sld [smem:[%s459_s3 + %s1270_s17]]  ;;  %s1272_s0 = smov (!%p486_p6, %s94_s0), 0 }
  0xc6   : > { %s1108_s6 = sld [smem:[%s461_s22 + %s1272_s0]]  ;;  %s199_s25 = sshll.u32 %s190_s10, 4  ;;  %s200_s25 = int_to_ptr.vmem [resolvable:$true] %s199_s25 }
  0xc7   : > { %s205_s30 = scalar_lea.vmem %s887_s26, 7 [#allocation5] }
  0xc8   : > { %s214_s0 = sshll.u32 %s205_s30, 4  ;;  %s215_s0 = int_to_ptr.vmem [resolvable:$true] %s214_s0 }
  0xcb   : > { %p90_p5 = scmp.gt.s32.totalorder %s89_s29, 0  ;;  %p398_p10 = scmp.lt.s32.totalorder %s89_s29, 511 }
  0xcc   : > { %p96_p11 = scmp.gt.s32.totalorder %s1108_s6, 0 }
  0xcd   : > { %s1274_s29 = smov (!%p90_p5, %s89_s29), 0 }
  0xce   : > { %s1276_s29 = smov (!%p398_p10, %s1274_s29), 511 }
  0xcf   : > { %s97_s3 = scalar_select %p96_p11, %s1108_s6, 0 }
  0xd0   : > { %s414_s17 = sshll.u32 %s1276_s29, 4 }
  0xd1   : > { %s189_s4 = scalar_lea.hbm %s1226_s1, %s414_s17 }
  0xd2   : > { %s677_s8 = scalar_lea.hbm %s189_s4, 16  ;;  %p682_p0 = scmp.lt.s32.totalorder %s189_s4, %s1226_s1 }
  0xd3   : > { %p678_p3 = scmp.ne.s32.totalorder %s189_s4, %s677_s8  ;;  %p683_p1 = scmp.lt.s32.totalorder %s922_s28, %s677_s8 }
  0xd5   : > { %p679_p8 = pnand %p678_p3, %p486_p6  ;;  %p684_p7 = por %p683_p1, %p682_p0 }
  0xd7   : > { %p680_p12 = pneg %p679_p8 }
  0xd9   : > { %p685_p9 = pnand %p684_p7, %p680_p12 }
  0xdb   : > { %688 = shalt.err (!%p685_p9)  }
  0xdc   : > { %s689_s26 = scalar_lea.vmem %s200_s25, 16  ;;  %p696_p11 = scmp.lt.s32.totalorder %s200_s25, %s932_s7 }
  0xdd   : > { %p690_p13 = scmp.ne.s32.totalorder %s200_s25, %s689_s26  ;;  %p697_p2 = scmp.lt.s32.totalorder %s935_s9, %s689_s26 }
  0xdf   : > { %p691_p5 = pnand %p690_p13, %p486_p6  ;;  %p698_p3 = por %p697_p2, %p696_p11 }
  0xe1   : > { %p692_p10 = pneg %p691_p5 }
  0xe3   : > { %p699_p8 = pnand %p698_p3, %p692_p10 }
  0xe5   : > { %702 = shalt.err (!%p699_p8)  }
  0xe6   : > { %469 = dma.hbm_to_vmem [thread:$0]  (%p486_p6), %s189_s4, 16, %s200_s25, [#allocation2 + $0x6] }
  0xe7   : > { %p1235_p12 = scmp.lt.s32.totalorder %s1108_s6, 511 }
  0xe9   : > { %s1278_s3 = smov (!%p1235_p12, %s97_s3), 511 }
  0xea   : > { %s415_s23 = sshll.u32 %s1278_s3, 4 }
  0xeb   : > { %s204_s10 = scalar_lea.hbm %s1226_s1, %s415_s23 }
  0xec   : > { %s703_s30 = scalar_lea.hbm %s204_s10, 16  ;;  %p708_p7 = scmp.lt.s32.totalorder %s204_s10, %s1226_s1 }
  0xed   : > { %p704_p0 = scmp.ne.s32.totalorder %s204_s10, %s703_s30  ;;  %p709_p9 = scmp.lt.s32.totalorder %s922_s28, %s703_s30 }
  0xef   : > { %p705_p2 = pnand %p704_p0, %p486_p6  ;;  %p710_p13 = por %p709_p9, %p708_p7 }
  0xf1   : > { %p706_p1 = pneg %p705_p2 }
  0xf3   : > { %p711_p5 = pnand %p710_p13, %p706_p1 }
  0xf5   : > { %714 = shalt.err (!%p711_p5)  }
  0xf6   : > { %s715_s6 = scalar_lea.vmem %s215_s0, 16  ;;  %p722_p8 = scmp.lt.s32.totalorder %s215_s0, %s932_s7 }
  0xf7   : > { %p716_p10 = scmp.ne.s32.totalorder %s215_s0, %s715_s6  ;;  %p723_p12 = scmp.lt.s32.totalorder %s935_s9, %s715_s6 }
  0xf9   : > { %p717_p11 = pnand %p716_p10, %p486_p6  ;;  %p724_p0 = por %p723_p12, %p722_p8 }
  0xfb   : > { %p718_p3 = pneg %p717_p11 }
  0xfd   : > { %p725_p2 = pnand %p724_p0, %p718_p3 }
  0xff   : > { %728 = shalt.err (!%p725_p2)  }
 0x100   : > { %470 = dma.hbm_to_vmem [thread:$0]  (%p486_p6), %s204_s10, 16, %s215_s0, [#allocation2 + $0x7] }
 0x101   : > { %772 = dma.done.wait (%p486_p6), [#allocation2], 16 }
 0x102   : > { %774 = vsyncadd (%p486_p6), [#allocation2], 4294967280 }
 0x103   : > { %776 = dma.done.wait (%p486_p6), [#allocation2 + $0x1], 16 }
 0x104   : > { %778 = vsyncadd (%p486_p6), [#allocation2 + $0x1], 4294967280 }
 0x105   : > { %780 = dma.done.wait (%p486_p6), [#allocation2 + $0x2], 16 }
 0x106   : > { %782 = vsyncadd (%p486_p6), [#allocation2 + $0x2], 4294967280 }
 0x107   : > { %784 = dma.done.wait (%p486_p6), [#allocation2 + $0x3], 16 }
 0x108   : > { %786 = vsyncadd (%p486_p6), [#allocation2 + $0x3], 4294967280 }
 0x109   : > { %788 = dma.done.wait (%p486_p6), [#allocation2 + $0x4], 16 }
 0x10a   : > { %790 = vsyncadd (%p486_p6), [#allocation2 + $0x4], 4294967280 }
 0x10b   : > { %792 = dma.done.wait (%p486_p6), [#allocation2 + $0x5], 16 }
 0x10c   : > { %794 = vsyncadd (%p486_p6), [#allocation2 + $0x5], 4294967280 }
 0x10d   : > { %796 = dma.done.wait (%p486_p6), [#allocation2 + $0x6], 16 }
 0x10e   : > { %798 = vsyncadd (%p486_p6), [#allocation2 + $0x6], 4294967280 }
 0x10f   : > { %800 = dma.done.wait (%p486_p6), [#allocation2 + $0x7], 16 }
 0x110   : > { %802 = vsyncadd (%p486_p6), [#allocation2 + $0x7], 4294967280  ;;  %s417_s28 = sshll.u32 %s817_s14, 7  ;;  %p1186_p1 = pnand %p486_p6, %p867_p4 }
 0x111   : > { %s247_s5 = scalar_lea.hbm %s1227_s2, %s417_s28  ;;  %s261_s0 = sand.u32 1, %s809_s12  }
 0x112   : > { %s236_s8 = scalar_lea.sflag [#allocation6], %s49_s21  ;;  %s729_s11 = scalar_lea.vmem %s896_s27, 128 }
 0x113   : > { %p730_p9 = scmp.ne.s32.totalorder %s896_s27, %s729_s11  ;;  %p731_p13 = pneg %p1186_p1 }
 0x114   : > { %p738_p11 = scmp.lt.s32.totalorder %s935_s9, %s729_s11  ;;  %p1237_p3 = scmp.lt.s32.totalorder %s896_s27, %s932_s7 }
 0x115   : > { %p732_p5 = pnand %p731_p13, %p730_p9 }
 0x116   : > { %p739_p8 = por %p738_p11, %p1237_p3 }
 0x117   : > { %p733_p10 = pneg %p732_p5 }
 0x119   : > { %p740_p12 = pnand %p739_p8, %p733_p10 }
 0x11b   : > { %743 = shalt.err (!%p740_p12)
}
 0x11c   : > { %s744_s19 = scalar_lea.hbm %s247_s5, 128  ;;  %s749_s12 = scalar_lea.hbm %s1227_s2, 256 }
 0x11d   : > { %p745_p4 = scmp.ne.s32.totalorder %s247_s5, %s744_s19  ;;  %p750_p2 = scmp.lt.s32.totalorder %s247_s5, %s1227_s2 }
 0x11e   : > { %p751_p7 = scmp.lt.s32.totalorder %s749_s12, %s744_s19 }
 0x11f   : > { %p747_p6 = pnand %p745_p4, %p731_p13 }
 0x120   : > { %p752_p9 = por %p751_p7, %p750_p2 }
 0x121   : > { %p748_p0 = pneg %p747_p6 }
 0x123   : > { %p753_p5 = pnand %p752_p9, %p748_p0 }
 0x125   : > { %756 = shalt.err (!%p753_p5)
}
 0x126   : > { %481 = dma.vmem_to_hbm [thread:$0]  (!%p1186_p1), %s896_s27, 128, %s247_s5, %s236_s8  }
 0x127   : > { %p1238_p13 = scmp.ne.s32.totalorder %s1230_s20, 0  ;;  %p1239_p10 = scmp.ge.s32.totalorder %s817_s14, 1 }
 0x128   : > { %s262_s7 = scalar_lea.sflag [#allocation6], %s261_s0 }
 0x129   : > { %p483_p11 = pnand %p1239_p10, %p1238_p13 }
 0x12b   : > { %p484_p3 = pneg %p483_p11 }
 0x12d   : > { %804 = dma.done.wait (%p484_p3), %s262_s7, 128  }
 0x12e   : > { %806 = vsyncadd (%p484_p3), %s262_s7, 4294967168  ;;  %p16_p7 = scmp.ge.s32.totalorder %s856_s15, 3   ;;  %s1240_s12 = smov %s813_s13 }
 0x12f   : > { %s1241_s13 = smov %s865_s18  ;;  %s1242_s14 = smov %s856_s15 }
 0x130   :  { %18 = sbr.rel (!%p16_p7) target bundleno = 8 (0x8), region = 105 }
 0x135   :  { %267 = vsyncpa [#allocation6], 1 }
 0x136   :  { %269 = vsyncpa [#allocation6 + $0x1], 1 }
 0x137   :  { %270 = vsyncmov [#allocation2] }
 0x13a   :  { %s271_s14 = vpop.sfrf %270 }
 0x13b   :  { %p420_p1 = scmp.ne.s32.totalorder %s271_s14, 0 }
 0x13d   :  { %275 = shalt.err (%p420_p1)  }
 0x13e   :  { %277 = vsyncmov [#allocation2 + $0x1] }
 0x141   :  { %s278_s20 = vpop.sfrf %277 }
 0x142   :  { %p421_p8 = scmp.ne.s32.totalorder %s278_s20, 0 }
 0x144   :  { %282 = shalt.err (%p421_p8)  }
 0x145   :  { %284 = vsyncmov [#allocation2 + $0x2] }
 0x148   :  { %s285_s27 = vpop.sfrf %284 }
 0x149   :  { %p422_p12 = scmp.ne.s32.totalorder %s285_s27, 0 }
 0x14b   :  { %289 = shalt.err (%p422_p12)  }
 0x14c   :  { %291 = vsyncmov [#allocation2 + $0x3] }
 0x14f   :  { %s292_s9 = vpop.sfrf %291 }
 0x150   :  { %p423_p4 = scmp.ne.s32.totalorder %s292_s9, 0 }
 0x152   :  { %296 = shalt.err (%p423_p4)  }
 0x153   :  { %298 = vsyncmov [#allocation2 + $0x4] }
 0x156   :  { %s299_s15 = vpop.sfrf %298 }
 0x157   :  { %p424_p6 = scmp.ne.s32.totalorder %s299_s15, 0 }
 0x159   :  { %303 = shalt.err (%p424_p6)  }
 0x15a   :  { %305 = vsyncmov [#allocation2 + $0x5] }
 0x15d   :  { %s306_s1 = vpop.sfrf %305 }
 0x15e   :  { %p425_p0 = scmp.ne.s32.totalorder %s306_s1, 0 }
 0x160   :  { %310 = shalt.err (%p425_p0)  }
 0x161   :  { %312 = vsyncmov [#allocation2 + $0x6] }
 0x164   :  { %s313_s2 = vpop.sfrf %312 }
 0x165   :  { %p426_p2 = scmp.ne.s32.totalorder %s313_s2, 0 }
 0x167   :  { %317 = shalt.err (%p426_p2)  }
 0x168   :  { %319 = vsyncmov [#allocation2 + $0x7] }
 0x16b   :  { %s320_s13 = vpop.sfrf %319 }
 0x16c   :  { %p427_p9 = scmp.ne.s32.totalorder %s320_s13, 0 }
 0x16e   :  { %324 = shalt.err (%p427_p9)  }

</bundles_post_ra>
